<compile_context>
chip_gen: v7x
topology: tpu7x:2x2x1
jax: 0.10.0
libtpu: 0.0.40
codegen_flags: <defaults>
</compile_context>

<pallas_src>
import functools

import jax
import jax.numpy as jnp
from jax.experimental import pallas as pl
from jax.experimental.pallas import tpu as pltpu


_LANE = 128
_DEFAULT_VMEM_CAP = 64 * 1024 * 1024     # conservative fallback (v7x physical)


def _round_up(x, m):
    return (x + m - 1) // m * m


def _vmem_capacity_bytes():
    """Per-generation VMEM capacity (trace-time query, safe fallback)."""
    try:
        cap = getattr(pltpu.get_tpu_info(), "vmem_capacity_bytes", None)
        if cap:
            return int(cap)
    except Exception:
        pass
    return _DEFAULT_VMEM_CAP


def _choose_batch_tile(b, d, in_itemsize, budget_bytes, tb_max):
    """Pick the batch tile TB and the grid size.

    VMEM model per batch element (bytes):
      2 inputs x 2 pipeline buffers x D x itemsize     (DMA tiles)
      + ~28 B x D                                      (f32/bf16 in-kernel temps:
                                                        x_t, y_t, diff, diff_bf16,
                                                        matmul out, fused products)
    """
    per_elem = 4 * d * in_itemsize + 28 * d + 16
    tb = budget_bytes // max(per_elem, 1)
    tb = min(tb, tb_max)
    tb = max(_LANE, (tb // _LANE) * _LANE)
    tb = min(tb, _round_up(b, _LANE))                 # don't over-tile tiny batches
    if b >= 2 * _LANE:
        # Keep >= 2 grid steps so v7x's two TensorCores both get work.
        tb = min(tb, _round_up((b + 1) // 2, _LANE))
    if tb >= b:
        tb = b                                        # single full-batch block
    grid = (b + tb - 1) // tb
    return tb, grid


# ---------------------------------------------------------------------------
# Pallas kernel: one batch tile.  Inputs arrive (TB, D) in their native dtype;
# batch is moved to the lane axis inside the kernel so the whole post-reduction
# tail (4 exps + mixture) and the output store are lane-dense.
# ---------------------------------------------------------------------------
def _hmk_kernel(params_ref, x_ref, y_ref, inv_ref, out_ref):
    # params_ref : SMEM f32[9] (scalar prefetch)
    #   [0] c  [1] 1/(2*sigma^2)
    #   [2] w_rbf  [3] w_poly  [4] w_spec0  [5] w_spec1  [6] w_maha
    #   [7] clamp(alpha0,0)  [8] clamp(alpha1,0)
    # x_ref / y_ref : VMEM (TB, D) input dtype — embeddings, batch on sublanes
    # inv_ref       : VMEM (D, D) bf16 — Mahalanobis metric (VMEM-resident)
    # out_ref       : VMEM (1, TB) f32 — kernel values, lane-dense
    c = params_ref[0]
    inv_two_sigma_sq = params_ref[1]
    w_rbf = params_ref[2]
    w_poly = params_ref[3]
    w_spec0 = params_ref[4]
    w_spec1 = params_ref[5]
    w_maha = params_ref[6]
    a0 = params_ref[7]
    a1 = params_ref[8]

    # Relayout batch -> lanes (XLU transpose; XLU is otherwise mostly idle).
    x = jnp.transpose(x_ref[...]).astype(jnp.float32)      # (D, TB)
    y = jnp.transpose(y_ref[...]).astype(jnp.float32)      # (D, TB)

    diff = x - y                                            # (D, TB) f32
    # Per-example scalars land as (1, TB): full 128-lane utilization for all
    # downstream exp / multiply-add work and for the output store.
    dist_sq = jnp.sum(diff * diff, axis=0, keepdims=True)   # (1, TB)
    dot_xy = jnp.sum(x * y, axis=0, keepdims=True) + c      # (1, TB)

    # --- RBF kernel ---
    k_rbf = jnp.exp(-dist_sq * inv_two_sigma_sq)

    # --- Polynomial kernel (degree 2, static; clamp matches torch.clamp) ---
    base = jnp.maximum(dot_xy, 1e-12)
    k_poly = base * base

    # --- Spectral mixture kernel (lambdas & mixture weights folded) ---
    k_spec = w_spec0 * jnp.exp(-a0 * dist_sq) + w_spec1 * jnp.exp(-a1 * dist_sq)

    # --- Mahalanobis kernel: quad_i = d_i^T M d_i.  bf16 MXU, f32 accumulate.
    m = jnp.dot(inv_ref[...], diff.astype(jnp.bfloat16),
                preferred_element_type=jnp.float32)          # (D, TB)
    quad = jnp.sum(m * diff, axis=0, keepdims=True)          # (1, TB)
    k_maha = jnp.exp(-0.5 * quad)

    # --- Hierarchical mixture (top/local/global weights pre-folded) ---
    out_ref[...] = (w_rbf * k_rbf + w_poly * k_poly + k_spec
                    + w_maha * k_maha).astype(out_ref.dtype)


# ---------------------------------------------------------------------------
# Parameters + wrapper (softmaxes, scalar folding, tiling).
# ---------------------------------------------------------------------------
def init_hmk_params(d):
    """Deterministic init mirroring the PyTorch __init__."""
    return dict(
        local_logits=jnp.zeros((2,), jnp.float32),
        global_logits=jnp.zeros((2,), jnp.float32),
        top_logits=jnp.zeros((2,), jnp.float32),
        sigma=jnp.float32(1.0),
        c=jnp.float32(1.0),
        lambdas=jnp.array([1.0, 0.5], jnp.float32),
        alphas=jnp.array([1.0, 0.1], jnp.float32),
        maha_inv=jnp.eye(d, dtype=jnp.float32),
    )


def _fold_scalars(params):
    lw = jax.nn.softmax(params["local_logits"])
    gw = jax.nn.softmax(params["global_logits"])
    tw = jax.nn.softmax(params["top_logits"])
    sigma = jnp.maximum(params["sigma"], 1e-6)
    lam = params["lambdas"]
    al = params["alphas"]
    return jnp.stack([
        params["c"],
        1.0 / (2.0 * sigma * sigma),
        tw[0] * lw[0],                 # w_rbf   = tau_local  * alpha_rbf
        tw[0] * lw[1],                 # w_poly  = tau_local  * alpha_poly
        tw[1] * gw[0] * lam[0],        # w_spec0 = tau_global * alpha_spec * lam0
        tw[1] * gw[0] * lam[1],        # w_spec1 = tau_global * alpha_spec * lam1
        tw[1] * gw[1],                 # w_maha  = tau_global * alpha_maha
        jnp.maximum(al[0], 0.0),
        jnp.maximum(al[1], 0.0),
    ]).astype(jnp.float32)


@functools.partial(jax.jit, static_argnames=("tb_max",))
def hmk_forward(params, emb_x, emb_y, tb_max=8192):
    b, d = emb_x.shape
    assert emb_y.shape == (b, d)
    itemsize = jnp.dtype(emb_x.dtype).itemsize

    vmem_cap = _vmem_capacity_bytes()
    budget = vmem_cap // 4                     # tile-sizing budget (incl. temps)
    vmem_limit = min(vmem_cap // 2, 128 * 1024 * 1024)
    tb, grid0 = _choose_batch_tile(b, d, itemsize, budget, tb_max)

    scalars = _fold_scalars(params)
    inv_bf16 = params["maha_inv"].astype(jnp.bfloat16)   # tiny (D, D), VMEM-resident

    cost = pl.CostEstimate(
        flops=int(2 * d * d * b + 12 * d * b),
        transcendentals=int(4 * b),
        bytes_accessed=int(2 * b * d * itemsize + 2 * d * d + 4 * b + 4 * 9),
    )

    out = pl.pallas_call(
        _hmk_kernel,
        out_shape=jax.ShapeDtypeStruct((1, b), jnp.float32),
        grid_spec=pltpu.PrefetchScalarGridSpec(
            num_scalar_prefetch=1,                           # folded scalars -> SMEM
            grid=(grid0,),
            in_specs=[
                pl.BlockSpec((tb, d), lambda i, p: (i, 0)),  # emb_x tile (native layout)
                pl.BlockSpec((tb, d), lambda i, p: (i, 0)),  # emb_y tile (native layout)
                pl.BlockSpec((d, d), lambda i, p: (0, 0)),   # maha_inv, resident
            ],
            out_specs=pl.BlockSpec((1, tb), lambda i, p: (0, i)),
        ),
        compiler_params=pltpu.CompilerParams(
            dimension_semantics=("parallel",),               # shard tiles across TCs
            vmem_limit_bytes=int(vmem_limit),
        ),
        cost_estimate=cost,
    )(scalars, emb_x, emb_y, inv_bf16)

    return out[0]                                            # (batch,)


# ---------------------------------------------------------------------------
# Pure-JAX f32 reference (matches the PyTorch module's semantics).
# ---------------------------------------------------------------------------
def hmk_reference(params, emb_x, emb_y):
    x = emb_x.astype(jnp.float32)
    y = emb_y.astype(jnp.float32)
    diff = x - y
    dist_sq = jnp.sum(diff * diff, axis=-1)
    sigma = jnp.maximum(params["sigma"], 1e-6)
    k_rbf = jnp.exp(-dist_sq / (2.0 * sigma ** 2))
    dot_xy = jnp.sum(x * y, axis=-1) + params["c"]
    k_poly = jnp.maximum(dot_xy, 1e-12) ** 2
    lam, al = params["lambdas"], params["alphas"]
    k_spec = (lam[0] * jnp.exp(-jnp.maximum(al[0], 0.0) * dist_sq)
              + lam[1] * jnp.exp(-jnp.maximum(al[1], 0.0) * dist_sq))
    quad = jnp.sum((diff @ params["maha_inv"]) * diff, axis=-1)
    k_maha = jnp.exp(-0.5 * quad)
    lw = jax.nn.softmax(params["local_logits"])
    gw = jax.nn.softmax(params["global_logits"])
    tw = jax.nn.softmax(params["top_logits"])
    k_local = lw[0] * k_rbf + lw[1] * k_poly
    k_global = gw[0] * k_spec + gw[1] * k_maha
    return tw[0] * k_local + tw[1] * k_global


if __name__ == "__main__":
    key = jax.random.PRNGKey(0)

    # Small canonical shapes.
    batch, d = 8, 32
    kx, ky = jax.random.split(key)
    emb_x = jax.random.normal(kx, (batch, d), dtype=jnp.float32)
    emb_y = jax.random.normal(ky, (batch, d), dtype=jnp.float32)
    params = init_hmk_params(d)

    out = jax.block_until_ready(hmk_forward(params, emb_x, emb_y))
    ref = hmk_reference(params, emb_x, emb_y)
    assert out.shape == (batch,)
    assert jnp.allclose(out, ref, rtol=1e-3, atol=1e-5), (out, ref)

    # Multi-tile pipelined path: grid >= 2 with a masked (non-dividing) tail
    # block and the VMEM-resident maha_inv reused across tiles.
    batch2 = 300
    kx2, ky2 = jax.random.split(jax.random.PRNGKey(1))
    ex2 = jax.random.normal(kx2, (batch2, d), dtype=jnp.float32)
    ey2 = jax.random.normal(ky2, (batch2, d), dtype=jnp.float32)
    out2 = jax.block_until_ready(hmk_forward(params, ex2, ey2))
    ref2 = hmk_reference(params, ex2, ey2)
    assert out2.shape == (batch2,)
    assert jnp.allclose(out2, ref2, rtol=1e-3, atol=1e-5), (out2, ref2)

    print("KERNEL_OK")
</pallas_src>

<mosaic_0001>
module attributes {stable_mosaic.version = 11 : i64} {
  func.func @_hmk_kernel(%arg0: i32, %arg1: memref<9xf32, #tpu.memory_space<smem>>, %arg2: memref<8x32xf32, #tpu.memory_space<vmem>>, %arg3: memref<8x32xf32, #tpu.memory_space<vmem>>, %arg4: memref<32x32xbf16, #tpu.memory_space<vmem>>, %arg5: memref<1x8xf32, #tpu.memory_space<vmem>>) attributes {dimension_semantics = [#tpu.dimension_semantics<parallel>], iteration_bounds = array<i64: 1>, scalar_prefetch = 1 : i64, scratch_operands = 0 : i64, tpu.core_type = #tpu.core_type<tc>, window_params = [{transform_indices = @transform_0, window_bounds = array<i64: 8, 32>}, {transform_indices = @transform_1, window_bounds = array<i64: 8, 32>}, {pipeline_mode = #tpu.pipeline_mode<synchronous>, transform_indices = @transform_2, window_bounds = array<i64: 32, 32>}, {transform_indices = @transform_3, window_bounds = array<i64: 1, 8>}]} {
    %c0 = arith.constant 0 : index
    %0 = memref.load %arg1[%c0] : memref<9xf32, #tpu.memory_space<smem>>
    %c1 = arith.constant 1 : index
    %1 = memref.load %arg1[%c1] : memref<9xf32, #tpu.memory_space<smem>>
    %c2 = arith.constant 2 : index
    %2 = memref.load %arg1[%c2] : memref<9xf32, #tpu.memory_space<smem>>
    %c3 = arith.constant 3 : index
    %3 = memref.load %arg1[%c3] : memref<9xf32, #tpu.memory_space<smem>>
    %c4 = arith.constant 4 : index
    %4 = memref.load %arg1[%c4] : memref<9xf32, #tpu.memory_space<smem>>
    %c5 = arith.constant 5 : index
    %5 = memref.load %arg1[%c5] : memref<9xf32, #tpu.memory_space<smem>>
    %c6 = arith.constant 6 : index
    %6 = memref.load %arg1[%c6] : memref<9xf32, #tpu.memory_space<smem>>
    %c7 = arith.constant 7 : index
    %7 = memref.load %arg1[%c7] : memref<9xf32, #tpu.memory_space<smem>>
    %c8 = arith.constant 8 : index
    %8 = memref.load %arg1[%c8] : memref<9xf32, #tpu.memory_space<smem>>
    %c0_0 = arith.constant 0 : index
    %c0_1 = arith.constant 0 : index
    %9 = vector.load %arg2[%c0_0, %c0_1] : memref<8x32xf32, #tpu.memory_space<vmem>>, vector<8x32xf32>
    %10 = tpu.transpose %9, [1, 0] : vector<8x32xf32> -> vector<32x8xf32>
    %c0_2 = arith.constant 0 : index
    %c0_3 = arith.constant 0 : index
    %11 = vector.load %arg3[%c0_2, %c0_3] : memref<8x32xf32, #tpu.memory_space<vmem>>, vector<8x32xf32>
    %12 = tpu.transpose %11, [1, 0] : vector<8x32xf32> -> vector<32x8xf32>
    %13 = arith.subf %10, %12 : vector<32x8xf32>
    %14 = arith.mulf %13, %13 : vector<32x8xf32>
    %cst = arith.constant dense<0.000000e+00> : vector<8xf32>
    %15 = vector.multi_reduction <add>, %14, %cst [0] : vector<32x8xf32> to vector<8xf32>
    %16 = vector.shape_cast %15 : vector<8xf32> to vector<1x8xf32>
    %17 = arith.mulf %10, %12 : vector<32x8xf32>
    %cst_4 = arith.constant dense<0.000000e+00> : vector<8xf32>
    %18 = vector.multi_reduction <add>, %17, %cst_4 [0] : vector<32x8xf32> to vector<8xf32>
    %19 = vector.shape_cast %18 : vector<8xf32> to vector<1x8xf32>
    %20 = vector.broadcast %0 : f32 to vector<1x8xf32>
    %21 = arith.addf %19, %20 : vector<1x8xf32>
    %cst_5 = arith.constant 0.000000e+00 : f32
    %22 = vector.broadcast %cst_5 : f32 to vector<1x8xf32>
    %23 = arith.subf %22, %16 : vector<1x8xf32>
    %24 = vector.broadcast %1 : f32 to vector<1x8xf32>
    %25 = arith.mulf %23, %24 : vector<1x8xf32>
    %26 = math.exp %25 : vector<1x8xf32>
    %cst_6 = arith.constant 9.99999996E-13 : f32
    %27 = vector.broadcast %cst_6 : f32 to vector<1x8xf32>
    %28 = arith.maximumf %21, %27 : vector<1x8xf32>
    %29 = arith.mulf %28, %28 : vector<1x8xf32>
    %cst_7 = arith.constant 0.000000e+00 : f32
    %30 = arith.subf %cst_7, %7 : f32
    %31 = vector.broadcast %30 : f32 to vector<1x8xf32>
    %32 = arith.mulf %31, %16 : vector<1x8xf32>
    %33 = math.exp %32 : vector<1x8xf32>
    %34 = vector.broadcast %4 : f32 to vector<1x8xf32>
    %35 = arith.mulf %34, %33 : vector<1x8xf32>
    %cst_8 = arith.constant 0.000000e+00 : f32
    %36 = arith.subf %cst_8, %8 : f32
    %37 = vector.broadcast %36 : f32 to vector<1x8xf32>
    %38 = arith.mulf %37, %16 : vector<1x8xf32>
    %39 = math.exp %38 : vector<1x8xf32>
    %40 = vector.broadcast %5 : f32 to vector<1x8xf32>
    %41 = arith.mulf %40, %39 : vector<1x8xf32>
    %42 = arith.addf %35, %41 : vector<1x8xf32>
    %c0_9 = arith.constant 0 : index
    %c0_10 = arith.constant 0 : index
    %43 = vector.load %arg4[%c0_9, %c0_10] : memref<32x32xbf16, #tpu.memory_space<vmem>>, vector<32x32xbf16>
    %44 = arith.truncf %13 : vector<32x8xf32> to vector<32x8xbf16>
    %cst_11 = arith.constant dense<0.000000e+00> : vector<32x8xf32>
    %45 = tpu.matmul %43, %44, %cst_11 {dimension_numbers = #tpu.dot_dimension_numbers<[1], [0], [0], [1], [0, 0, 1, 1], [], []>} : vector<32x32xbf16>, vector<32x8xbf16>, vector<32x8xf32> -> vector<32x8xf32>
    %46 = arith.mulf %45, %13 : vector<32x8xf32>
    %cst_12 = arith.constant dense<0.000000e+00> : vector<8xf32>
    %47 = vector.multi_reduction <add>, %46, %cst_12 [0] : vector<32x8xf32> to vector<8xf32>
    %48 = vector.shape_cast %47 : vector<8xf32> to vector<1x8xf32>
    %cst_13 = arith.constant -5.000000e-01 : f32
    %49 = vector.broadcast %cst_13 : f32 to vector<1x8xf32>
    %50 = arith.mulf %49, %48 : vector<1x8xf32>
    %51 = math.exp %50 : vector<1x8xf32>
    %52 = vector.broadcast %2 : f32 to vector<1x8xf32>
    %53 = arith.mulf %52, %26 : vector<1x8xf32>
    %54 = vector.broadcast %3 : f32 to vector<1x8xf32>
    %55 = arith.mulf %54, %29 : vector<1x8xf32>
    %56 = arith.addf %53, %55 : vector<1x8xf32>
    %57 = arith.addf %56, %42 : vector<1x8xf32>
    %58 = vector.broadcast %6 : f32 to vector<1x8xf32>
    %59 = arith.mulf %58, %51 : vector<1x8xf32>
    %60 = arith.addf %57, %59 : vector<1x8xf32>
    %c0_14 = arith.constant 0 : index
    %c0_15 = arith.constant 0 : index
    %61 = vector.load %arg5[%c0_14, %c0_15] : memref<1x8xf32, #tpu.memory_space<vmem>>, vector<1x8xf32>
    tpu.vector_store %arg5[%c0_14, %c0_15], %60 {strides = array<i32>} : memref<1x8xf32, #tpu.memory_space<vmem>>, vector<1x8xf32>,
    return
  }
  func.func @transform_0(%arg0: i32, %arg1: memref<9xf32, #tpu.memory_space<smem>>) -> (i32, i32) {
    %c0_i32 = arith.constant 0 : i32
    %c0_i32_0 = arith.constant 0 : i32
    return %arg0, %c0_i32 : i32, i32
  }
  func.func @transform_1(%arg0: i32, %arg1: memref<9xf32, #tpu.memory_space<smem>>) -> (i32, i32) {
    %c0_i32 = arith.constant 0 : i32
    %c0_i32_0 = arith.constant 0 : i32
    return %arg0, %c0_i32 : i32, i32
  }
  func.func @transform_2(%arg0: i32, %arg1: memref<9xf32, #tpu.memory_space<smem>>) -> (i32, i32) {
    %c0_i32 = arith.constant 0 : i32
    %c0_i32_0 = arith.constant 0 : i32
    %c0_i32_1 = arith.constant 0 : i32
    return %c0_i32, %c0_i32_0 : i32, i32
  }
  func.func @transform_3(%arg0: i32, %arg1: memref<9xf32, #tpu.memory_space<smem>>) -> (i32, i32) {
    %c0_i32 = arith.constant 0 : i32
    %c0_i32_0 = arith.constant 0 : i32
    return %c0_i32, %arg0 : i32, i32
  }
}

</mosaic_0001>

<bundles_post_ra>
// kernel: hmk_forward.1
= control target key start
LH: loop header
LB: loop body
LE: loop exit
PB: predicated region body
PF: predicated region fallthrough
CT: control target
= control target key end

     0   :  { %s421_s0 = inlined_call_operand.vmem [shape: f32[9], index: 0, kind: input, shape index: {}]   ;;  %s422_s1 = inlined_call_operand.vmem [shape: f32[8,32], index: 1, kind: input, shape index: {}]   ;;  %s423_s2 = inlined_call_operand.vmem [shape: f32[8,32], index: 2, kind: input, shape index: {}]   ;;  %s424_s3 = inlined_call_operand.vmem [shape: bf16[32,32], index: 3, kind: input, shape index: {}]   ;;  %s425_s4 = inlined_call_operand.hbm [shape: f32[1,8], index: 4, kind: output, shape index: {}]  }
   0x1   :  { %s9_s17 = sshll.u32 %s421_s0, 4  ;;  %s10_s17 = int_to_ptr.vmem [resolvable:$true] %s9_s17 }
   0x2   :  { %s315_s18 = scalar_lea.vmem %s10_s17, 16  ;;  %p320_p1 = scmp.lt.s32.totalorder %s10_s17, %s10_s17 }
   0x3   :  { %p316_p0 = scmp.ne.s32.totalorder %s10_s17, %s315_s18  ;;  %p321_p2 = scmp.lt.s32.totalorder %s315_s18, %s315_s18 }
   0x5   :  { %p322_p3 = por %p321_p2, %p320_p1 }
   0x7   :  { %p323_p4 = pnand %p322_p3, %p316_p0 }
   0x9   :  { %326 = shalt.err (!%p323_p4)  }
   0xa   :  { %s353_s19 = smov [#allocation3]  }
   0xb   :  { %12 = dma.vmem_to_smem %s10_s17, 16, %s353_s19, [#allocation2] }
   0xc   :  { %349 = dma.done.wait [#allocation2], 16 }
   0xd   :  { %350 = vsyncadd [#allocation2], 4294967280 }
   0xe   :  { %14 = sfence }
   0xf   :  { %v32_v0 = vld [vmem:[%s422_s1] sm:$0xff] }
  0x10   :  { %33 = vxpose.xlu0.b32.start.end [1/1] (short) (narrow) %v32_v0, 32 }
  0x11   :  { %15 = vsyncpa [#allocation5], 0  ;;  %v65_v1 = vld [vmem:[%s423_s2] sm:$0xff]  ;;  %vm177_vm0 = vcmask 261120   ;;  %vm106_vm1 = vcmask 64512   ;;  %v306_v28 = vld [vmem:[%s424_s3 + $0x8] sm:$0xff]  }
  0x12   :  { %v305_v2 = vld [vmem:[%s424_s3] sm:$0xff]   ;;  %s284_s3 = sld [smem:[#allocation3 + $0x7]]  ;;  %s285_s25 = sld [smem:[#allocation3 + $0x8]]  ;;  %vm262_vm2 = vcmask 57344  }
  0x13   :  { %298 = vmatprep.mubr.msk.bf16.mxu0 %vm177_vm0, %v305_v2  ;;  %s278_s26 = sld [smem:[#allocation3 + $0x1]]  ;;  %s23_s29 = sld [smem:[#allocation3]] }
  0x14   :  { %s279_s30 = sld [smem:[#allocation3 + $0x2]]  ;;  %s280_s5 = sld [smem:[#allocation3 + $0x3]] }
  0x15   :  { %s281_s6 = sld [smem:[#allocation3 + $0x4]]  ;;  %s282_s7 = sld [smem:[#allocation3 + $0x5]] }
  0x16   :  { %s283_s8 = sld [smem:[#allocation3 + $0x6]]  ;;  %s354_s9 = smov [#allocation4]  }
  0x17   :  { %s270_s10 = sshll.u32 %s354_s9, 4  ;;  %s271_s10 = int_to_ptr.vmem [resolvable:$true] %s270_s10 }
  0x18   :  { %s146_s27 = ssub.f32 0.0, %s284_s3  ;;  %s327_s11 = scalar_lea.vmem %s271_s10, 16 }
  0x19   :  { %s153_s28 = ssub.f32 0.0, %s285_s25  ;;  %v140_v61 = vstv %s278_s26  ;;  %p328_p5 = scmp.ne.s32.totalorder %s271_s10, %s327_s11 }
  0x1a   :  { %v147_v63 = vstv %s146_s27  ;;  %s331_s12 = scalar_lea.vmem %s271_s10, 32  ;;  %p332_p6 = scmp.lt.s32.totalorder %s271_s10, %s271_s10 }
  0x1b   :  { %v154_v2 = vstv %s153_s28  ;;  %p333_p7 = scmp.lt.s32.totalorder %s331_s12, %s327_s11 }
  0x1d   :  { %66 = vxpose.xlu0.b32.start.end [1/1] (short) (narrow) %v65_v1, 32  ;;  %p334_p8 = por %p333_p7, %p332_p6 }
  0x1f   :  { %p335_p9 = pnand %p334_p8, %p328_p5 }
  0x90   :  { %v49_v3 = vpop.trf.xlu0 }
  0x94   :  { %v50_v4 = vpop.trf.xlu0 }
  0x98   :  { %v51_v5 = vpop.trf.xlu0 }
  0x9c   :  { %v52_v6 = vpop.trf.xlu0 }
  0xa0   :  { %v82_v7 = vpop.trf.xlu0 }
  0xa1   :  { %v120_v8 = vmul.f32 %v82_v7, %v49_v3  ;;  %v98_v10 = vsub.f32 %v49_v3, %v82_v7 }
  0xa3   :  { %v124_v13 = vsel %vm106_vm1, %v120_v8, 0.0  ;;  %v102_v30 = vmul.f32 %v98_v10, %v98_v10 }
  0xa4   :  { %v83_v9 = vpop.trf.xlu0 }
  0xa5   :  { %v99_v11 = vsub.f32 %v50_v4, %v83_v9  ;;  %v121_v12 = vmul.f32 %v83_v9, %v50_v4  ;;  %v107_v34 = vsel %vm106_vm1, %v102_v30, 0.0  ;;  %v158_v30 = vstv %s282_s7 }
  0xa7   :  { %v125_v14 = vsel %vm106_vm1, %v121_v12, 0.0  ;;  %v165_v15 = vpack.c.bf16 %v99_v11, %v98_v10  ;;  %v103_v29 = vmul.f32 %v99_v11, %v99_v11 }
  0xa8   :  { %v126_v16 = vadd.f32 %v125_v14, %v124_v13  ;;  %v84_v17 = vpop.trf.xlu0 }
  0xa9   :  { %v122_v18 = vmul.f32 %v84_v17, %v51_v5  ;;  %294 = vmatprep.subr.bf16.mxu0 %v165_v15  ;;  %v100_v22 = vsub.f32 %v51_v5, %v84_v17  ;;  %v108_v32 = vsel %vm106_vm1, %v103_v29, 0.0  ;;  %v151_v29 = vstv %s281_s6 }
  0xaa   :  { %295 = vmatpush3.bf16.msra.mxu0 %v165_v15  ;;  %v109_v36 = vadd.f32 %v108_v32, %v107_v34 }
  0xab   :  { %v127_v19 = vsel %vm106_vm1, %v122_v18, 0.0  ;;  %v104_v31 = vmul.f32 %v100_v22, %v100_v22 }
  0xac   :  { %v128_v20 = vadd.f32 %v127_v19, %v126_v16  ;;  %v85_v21 = vpop.trf.xlu0  ;;  %v137_v16 = vstv %s23_s29 }
  0xad   :  { %v101_v23 = vsub.f32 %v52_v6, %v85_v21  ;;  %v123_v24 = vmul.f32 %v85_v21, %v52_v6  ;;  %v110_v35 = vsel %vm106_vm1, %v104_v31, 0.0  ;;  %v255_v31 = vstv %s280_s5 }
  0xae   :  { %v111_v38 = vadd.f32 %v110_v35, %v109_v36 }
  0xaf   :  { %v129_v25 = vsel %vm106_vm1, %v123_v24, 0.0  ;;  %v166_v26 = vpack.c.bf16 %v101_v23, %v100_v22  ;;  %v105_v33 = vmul.f32 %v101_v23, %v101_v23 }
  0xb0   :  { %v130_v27 = vadd.f32 %v129_v25, %v128_v20  ;;  %v253_v25 = vstv %s279_s30 }
  0xb1   :  { %296 = vmatprep.subr.bf16.mxu0 %v166_v26  ;;  %v112_v37 = vsel %vm106_vm1, %v105_v33, 0.0 }
  0xb2   :  { %297 = vmatpush3.bf16.msra.mxu0 %v166_v26  ;;  %v113_v39 = vadd.f32 %v112_v37, %v111_v38  ;;  %v131_v44 = vrot.slane %v130_v27, 4  ;;  %v259_v37 = vstv %s283_s8 }
  0xb4   :  { %v114_v40 = vrot.slane %v113_v39, 4  ;;  %v132_v48 = vadd.f32 %v131_v44, %v130_v27 }
  0xb5   :  { %299 = vmatmul.mubr.msk.bf16.vlgmr.msra.gmra.mrb[0].mxu0 %vm177_vm0, %v306_v28 }
  0xb6   :  { %v115_v41 = vadd.f32 %v114_v40, %v113_v39  ;;  %v133_v55 = vrot.slane %v132_v48, 2 }
  0xb8   :  { %v116_v42 = vrot.slane %v115_v41, 2  ;;  %v134_v1 = vadd.f32 %v133_v55, %v132_v48 }
  0xba   :  { %v117_v43 = vadd.f32 %v116_v42, %v115_v41  ;;  %v135_v9 = vrot.slane %v134_v1, 1 }
  0xbc   :  { %v118_v45 = vrot.slane %v117_v43, 1  ;;  %v136_v15 = vadd.f32 %v135_v9, %v134_v1 }
  0xbe   :  { %v119_v51 = vadd.f32 %v118_v45, %v117_v43  ;;  %v138_v19 = vadd.f32 %v137_v16, %v136_v15 }
  0xc0   :  { %v139_v59 = vsub.f32 0.0, %v119_v51  ;;  %v148_v6 = vmul.f32 %v147_v63, %v119_v51  ;;  %v155_v7 = vmul.f32 %v154_v2, %v119_v51 }
  0xc2   :  { %v141_v4 = vmul.f32 %v140_v61, %v139_v59  ;;  %v149_v12 = vmul.f32 1.442695, %v148_v6  ;;  %v156_v13 = vmul.f32 1.442695, %v155_v7 }
 0x188   :  { %v300_v46 = vpop.f32.mrb[0].mxu0 }
 0x189   :  { %v218_v47 = vpop.f32.mrb[1].mxu0  ;;  %v235_v53 = vmul.f32 %v300_v46, %v100_v22  ;;  %v144_v22 = vmax.f32 %v138_v19, 1e-12 }
 0x18a   :  { %v233_v49 = vmul.f32 %v218_v47, %v98_v10  ;;  %v301_v50 = vpop.f32.mrb[2].mxu0  ;;  %v142_v10 = vmul.f32 1.442695, %v141_v4 }
 0x18b   :  { %v221_v52 = vpop.f32.mrb[3].mxu0  ;;  %v236_v57 = vmul.f32 %v301_v50, %v101_v23  ;;  %v240_v62 = vsel %vm106_vm1, %v235_v53, 0.0  ;;  %v145_v27 = vmul.f32 %v144_v22, %v144_v22 }
 0x18c   :  { %v234_v54 = vmul.f32 %v221_v52, %v99_v11  ;;  %v237_v56 = vsel %vm106_vm1, %v233_v49, 0.0  ;;  %307 = vpow2.f32 %v142_v10 }
 0x18d   :  { %v242_v3 = vsel %vm106_vm1, %v236_v57, 0.0  ;;  %309 = vpow2.f32 %v149_v12  ;;  %v256_v35 = vmul.f32 %v255_v31, %v145_v27 }
 0x18e   :  { %v238_v58 = vsel %vm106_vm1, %v234_v54, 0.0  ;;  %311 = vpow2.f32 %v156_v13 }
 0x18f   :  { %v239_v60 = vadd.f32 %v238_v58, %v237_v56 }
 0x191   :  { %v241_v0 = vadd.f32 %v240_v62, %v239_v60 }
 0x193   :  { %v243_v5 = vadd.f32 %v242_v3, %v241_v0 }
 0x195   :  { %v244_v8 = vrot.slane %v243_v5, 4 }
 0x196   :  { %v308_v24 = vpop.eup %307 }
 0x197   :  { %v245_v11 = vadd.f32 %v244_v8, %v243_v5  ;;  %v310_v26 = vpop.eup %309  ;;  %v254_v32 = vmul.f32 %v308_v24, %v253_v25 }
 0x198   :  { %v312_v28 = vpop.eup %311  ;;  %v152_v33 = vmul.f32 %v310_v26, %v151_v29 }
 0x199   :  { %v246_v14 = vrot.slane %v245_v11, 2  ;;  %v159_v34 = vmul.f32 %v312_v28, %v158_v30  ;;  %v257_v36 = vadd.f32 %v256_v35, %v254_v32 }
 0x19b   :  { %v247_v17 = vadd.f32 %v246_v14, %v245_v11  ;;  %v160_v38 = vadd.f32 %v159_v34, %v152_v33 }
 0x19d   :  { %v248_v18 = vrot.slane %v247_v17, 1  ;;  %v258_v40 = vadd.f32 %v257_v36, %v160_v38 }
 0x19f   :  { %v249_v20 = vadd.f32 %v248_v18, %v247_v17 }
 0x1a1   :  { %v250_v21 = vmul.f32 -0.5, %v249_v20 }
 0x1a3   :  { %v251_v23 = vmul.f32 1.442695, %v250_v21 }
 0x1a5   :  { %313 = vpow2.f32 %v251_v23 }
 0x1af   :  { %v314_v39 = vpop.eup %313 }
 0x1b0   :  { %v260_v41 = vmul.f32 %v314_v39, %v259_v37 }
 0x1b2   :  { %v261_v42 = vadd.f32 %v260_v41, %v258_v40 }
 0x1b4   :  { %263 = vst.msk [vmem:[#allocation4] sm:$0x1] %vm262_vm2, %v261_v42 }
 0x1b5   :  { %338 = shalt.err (!%p335_p9)
}
 0x1b6   :  { %s339_s15 = scalar_lea.hbm %s425_s4, 16 }
 0x1b7   :  { %p340_p10 = scmp.ne.s32.totalorder %s425_s4, %s339_s15  ;;  %p343_p11 = scmp.lt.u32.totalorder %s339_s15, %s425_s4 }
 0x1b9   :  { %p345_p12 = pnand %p343_p11, %p340_p10 }
 0x1bb   :  { %348 = shalt.err (!%p345_p12)
}
 0x1bc   :  { %273 = dma.vmem_to_hbm [thread:$0]  %s271_s10, 16, %s425_s4, [#allocation5]  }
 0x1bd   :  { %351 = dma.done.wait [#allocation5], 16  }
 0x1be   :  { %352 = vsyncadd [#allocation5], 4294967280 }
 0x1bf   :  { %277 = vsyncpa [#allocation5], 1 }

</bundles_post_ra>
